<compile_context>
chip_gen: v7x
topology: tpu7x:2x2x1
jax: 0.10.0
libtpu: 0.0.40
codegen_flags: <defaults>
</compile_context>

<pallas_src>
import functools

import jax
import jax.numpy as jnp
from jax import lax
from jax.experimental import pallas as pl
from jax.experimental.pallas import tpu as pltpu


def _biattn_kernel(h_ref, u_ref, w_ref, ua_ref, ha_ref,
                   u_scaled_ref, u_term_ref, acc_ref,
                   *, mxu_dtype, exp_dtype):
    lh = pl.program_id(1)
    n_lh = pl.num_programs(1)
    dn_last = (((1,), (1,)), ((), ()))  # contract last dims (no in-kernel transposes)

    @pl.when(lh == 0)
    def _():
        # Batch-invariant u-side preprocessing, hoisted out of the Lh loop
        # (safe because the Lh axis is "arbitrary": it runs sequentially per batch).
        u_nat = u_ref[0]                                            # (Lu, D) native dtype
        w_mul = w_ref[0:1, :].astype(mxu_dtype)                     # (1, D)
        w_u = w_ref[1:2, :].astype(mxu_dtype)                       # (1, D)
        u_scaled_ref[...] = u_nat.astype(mxu_dtype) * w_mul         # (Lu, D)
        u_term_ref[...] = lax.dot_general(                          # (1, Lu)
            w_u, u_nat.astype(mxu_dtype), dn_last,
            preferred_element_type=jnp.float32)
        acc_ref[...] = jnp.zeros_like(acc_ref)

    h_mxu = h_ref[0].astype(mxu_dtype)                              # (tLh, D)

    # logits[i, j] = (h[i]*w_mul) . u[j] + w_u.u[j]
    # (h_term and bias dropped: softmax over j is invariant to per-row constants)
    s = lax.dot_general(h_mxu, u_scaled_ref[...], dn_last,
                        preferred_element_type=jnp.float32)         # (tLh, Lu)
    logits = s + u_term_ref[...]

    # Softmax over the u (last) axis — matches F.softmax(dim=1) on the 2-D view.
    m = jnp.max(logits, axis=-1, keepdims=True)
    e = jnp.exp((logits - m).astype(exp_dtype))                     # EUP; bf16 on v6e/v7x
    denom = jnp.sum(e.astype(jnp.float32), axis=-1, keepdims=True)  # (tLh, 1)
    inv = pl.reciprocal(denom, approx=True)
    inv = inv * (2.0 - denom * inv)                                 # one Newton step (near-exact)
    p = (e * inv.astype(e.dtype)).astype(mxu_dtype)                 # (tLh, Lu)

    # u_a[i, :] = sum_j p[i, j] * u[j, :]
    ua_ref[0] = jnp.dot(p, u_ref[0].astype(mxu_dtype),
                        preferred_element_type=jnp.float32).astype(ua_ref.dtype)

    # max_j p[i, j] == inv[i] exactly (max logit subtracted before exp), so the
    # h_a partial is just inv^T @ h — one tiny MXU contraction, no XLU row-max.
    acc_ref[...] += lax.dot_general(
        inv.astype(mxu_dtype), h_mxu, (((0,), (0,)), ((), ())),
        preferred_element_type=jnp.float32)                         # (1, D)

    @pl.when(lh == n_lh - 1)
    def _():
        ha_ref[0] = acc_ref[...].astype(ha_ref.dtype)


def _round_up(x, m):
    return ((x + m - 1) // m) * m


def _default_tiling():
    """(block_lh, vmem_limit_bytes) derived from the chip's VMEM capacity."""
    try:
        vmem_bytes = pltpu.get_tpu_info().vmem_capacity_bytes
    except Exception:
        vmem_bytes = 128 * 1024 * 1024
    if vmem_bytes <= 64 * 1024 * 1024:            # v7x-class (64 MiB per TC)
        return 256, (vmem_bytes * 3) // 4
    return 512, 96 * 1024 * 1024                  # v5e / v6e (128 MiB physical)


def _eup_supports_bf16():
    """bf16 transcendentals exist on v6e/v7x but NOT on v5e (or older)."""
    try:
        kind = jax.devices()[0].device_kind.lower()
    except Exception:
        return False
    return not any(t in kind for t in ("v2", "v3", "v4", "v5"))


def bi_attention_mine(h, u, weight, bias=None, *, block_lh=None,
                      use_bf16_matmul=False, vmem_limit_bytes=None):
    """h: (bs, Lh, D), u: (bs, Lu, D), weight: (1, 3D), bias: (1,) (unused: cancels)."""
    bs, Lh, D = h.shape
    bs_u, Lu, Du = u.shape
    assert Du == D and bs_u == bs
    assert h.dtype == u.dtype
    del bias  # exact: softmax over the u axis is invariant to per-row constants

    out_dtype = h.dtype

    default_block, default_vmem = _default_tiling()
    if block_lh is None:
        block_lh = default_block
    if vmem_limit_bytes is None:
        vmem_limit_bytes = default_vmem

    # bf16 MXU operands when inputs are bf16 (or explicitly requested); f32 MXU
    # matmuls are multi-pass emulation on v6e/v7x, so f32 callers can opt in.
    mxu_dtype = jnp.bfloat16 if (h.dtype == jnp.bfloat16 or use_bf16_matmul) \
        else jnp.float32
    # exp on the (tLh, Lu) logits is the binding unit for small D; bf16 EUP only
    # where the hardware supports it (never on v5e).
    exp_dtype = jnp.bfloat16 if (mxu_dtype == jnp.bfloat16 and _eup_supports_bf16()) \
        else jnp.float32

    # Even Lh tiling: sublane-aligned, at most 7 padded rows per tile.
    n_lh = pl.cdiv(Lh, block_lh)
    tLh = _round_up(pl.cdiv(Lh, n_lh), 8)
    Lh_pad = n_lh * tLh
    if Lh_pad != Lh:
        # Zero-padded h rows contribute exactly 0 to h_a; their u_a rows are sliced off.
        h = jnp.pad(h, ((0, 0), (0, Lh_pad - Lh), (0, 0)))

    # PyTorch concat order is (h*u, h, u); keep only the rows that survive the
    # softmax shift invariance: row 0 = w_mul, row 1 = w_u (w_h and bias dropped).
    wr = weight.reshape(3, D).astype(jnp.float32)
    w_slab = jnp.concatenate([wr[0:1, :], wr[2:3, :]], axis=0)       # (2, D)

    grid = (bs, n_lh)
    out_shape = (
        jax.ShapeDtypeStruct((bs, Lh_pad, D), out_dtype),   # u_a (per-row)
        jax.ShapeDtypeStruct((bs, 1, D), out_dtype),        # h_a (one row per batch)
    )

    grid_spec = pltpu.PrefetchScalarGridSpec(
        num_scalar_prefetch=0,
        grid=grid,
        in_specs=[
            pl.BlockSpec((1, tLh, D), lambda b, i: (b, i, 0)),   # h tile
            pl.BlockSpec((1, Lu, D), lambda b, i: (b, 0, 0)),    # full u (resident per b)
            pl.BlockSpec((2, D), lambda b, i: (0, 0)),           # weight slab (w_mul, w_u)
        ],
        out_specs=[
            pl.BlockSpec((1, tLh, D), lambda b, i: (b, i, 0)),
            pl.BlockSpec((1, 1, D), lambda b, i: (b, 0, 0)),     # accumulator over i
        ],
        scratch_shapes=[
            pltpu.VMEM((Lu, D), mxu_dtype),      # u * w_mul   (hoisted, per batch)
            pltpu.VMEM((1, Lu), jnp.float32),    # w_u . u     (hoisted, per batch)
            pltpu.VMEM((1, D), jnp.float32),     # f32 h_a accumulator
        ],
    )

    ua, ha = pl.pallas_call(
        functools.partial(_biattn_kernel, mxu_dtype=mxu_dtype, exp_dtype=exp_dtype),
        out_shape=out_shape,
        grid_spec=grid_spec,
        compiler_params=pltpu.CompilerParams(
            dimension_semantics=("parallel", "arbitrary"),
            vmem_limit_bytes=int(vmem_limit_bytes),
        ),
    )(h, u, w_slab)

    u_a = ua[:, :Lh, :] if Lh_pad != Lh else ua
    # Broadcast h_a over Lh outside the kernel (avoids Lh-x redundant HBM writeback).
    h_a = jnp.broadcast_to(ha, (bs, Lh, D))
    return u_a, h_a


def _reference(h, u, weight, bias):
    """Pure-JAX reproduction of the PyTorch forward for verification."""
    bs, Lh, D = h.shape
    _, Lu, _ = u.shape
    h_aug = jnp.broadcast_to(h[:, :, None, :], (bs, Lh, Lu, D))
    u_aug = jnp.broadcast_to(u[:, None, :, :], (bs, Lh, Lu, D))
    lin_in = jnp.concatenate((h_aug * u_aug, h_aug, u_aug), axis=-1)  # (bs,Lh,Lu,3D)
    logits = jnp.einsum("blud,d->blu", lin_in, weight[0]) + bias[0]
    p = jax.nn.softmax(logits, axis=-1)                               # (bs,Lh,Lu)
    u_a = jnp.einsum("blu,bud->bld", p, u)
    h_a = jnp.sum(jnp.max(p, axis=2)[:, :, None] * h, axis=1)         # (bs, D)
    h_a = jnp.broadcast_to(h_a[:, None, :], (bs, Lh, D))
    return u_a, h_a


def _check(h, u, weight, bias, **kwargs):
    u_a, h_a = bi_attention_mine(h, u, weight, bias, **kwargs)
    jax.block_until_ready((u_a, h_a))
    u_a_ref, h_a_ref = _reference(h, u, weight, bias)
    assert jnp.allclose(u_a, u_a_ref, atol=1e-3, rtol=1e-3), \
        float(jnp.max(jnp.abs(u_a - u_a_ref)))
    assert jnp.allclose(h_a, h_a_ref, atol=1e-3, rtol=1e-3), \
        float(jnp.max(jnp.abs(h_a - h_a_ref)))


if __name__ == "__main__":
    D = 32  # dim_h == dim_u == D (module asserts this)

    key = jax.random.PRNGKey(0)
    kh, ku, kw, kb, kh2, ku2 = jax.random.split(key, 6)

    # Deterministic Linear(3D -> 1) params (PyTorch-style uniform bound).
    bound = 1.0 / (3 * D) ** 0.5
    weight = jax.random.uniform(kw, (1, 3 * D), minval=-bound, maxval=bound,
                                dtype=jnp.float32)
    bias = jax.random.uniform(kb, (1,), minval=-bound, maxval=bound,
                              dtype=jnp.float32)

    # Case 1: small aligned shapes, single Lh tile.
    bs, Lh, Lu = 2, 8, 8
    h = jax.random.normal(kh, (bs, Lh, D), dtype=jnp.float32)
    u = jax.random.normal(ku, (bs, Lu, D), dtype=jnp.float32)
    _check(h, u, weight, bias)

    # Case 2: non-multiple-of-8 Lh with a small block -> exercises the Lh tile
    # loop, the once-per-batch u hoist, the h_a accumulator, and row padding.
    bs2, Lh2, Lu2 = 2, 20, 8
    h2 = jax.random.normal(kh2, (bs2, Lh2, D), dtype=jnp.float32)
    u2 = jax.random.normal(ku2, (bs2, Lu2, D), dtype=jnp.float32)
    _check(h2, u2, weight, bias, block_lh=8)

    print("KERNEL_OK")
</pallas_src>

<mosaic_0001>
module attributes {stable_mosaic.version = 11 : i64} {
  func.func @_biattn_kernel(%arg0: i32, %arg1: i32, %arg2: memref<1x8x32xf32, #tpu.memory_space<vmem>>, %arg3: memref<1x8x32xf32, #tpu.memory_space<vmem>>, %arg4: memref<2x32xf32, #tpu.memory_space<vmem>>, %arg5: memref<1x8x32xf32, #tpu.memory_space<vmem>>, %arg6: memref<1x1x32xf32, #tpu.memory_space<vmem>>, %arg7: memref<8x32xf32, #tpu.memory_space<vmem>>, %arg8: memref<1x8xf32, #tpu.memory_space<vmem>>, %arg9: memref<1x32xf32, #tpu.memory_space<vmem>>) attributes {dimension_semantics = [#tpu.dimension_semantics<parallel>, #tpu.dimension_semantics<arbitrary>], iteration_bounds = array<i64: 2, 1>, scalar_prefetch = 0 : i64, scratch_operands = 3 : i64, tpu.core_type = #tpu.core_type<tc>, window_params = [{transform_indices = @transform_0, window_bounds = array<i64: 1, 8, 32>}, {transform_indices = @transform_1, window_bounds = array<i64: 1, 8, 32>}, {pipeline_mode = #tpu.pipeline_mode<synchronous>, transform_indices = @transform_2, window_bounds = array<i64: 2, 32>}, {transform_indices = @transform_3, window_bounds = array<i64: 1, 8, 32>}, {transform_indices = @transform_4, window_bounds = array<i64: 1, 1, 32>}]} {
    %c0_i32 = arith.constant 0 : i32
    %0 = arith.cmpi eq, %arg1, %c0_i32 : i32
    %1 = arith.extui %0 : i1 to i32
    %c0_i32_0 = arith.constant 0 : i32
    %2 = arith.cmpi ne, %1, %c0_i32_0 : i32
    scf.if %2 {
      %c0_24 = arith.constant 0 : index
      %c0_25 = arith.constant 0 : index
      %c0_26 = arith.constant 0 : index
      %37 = vector.load %arg3[%c0_24, %c0_25, %c0_26] : memref<1x8x32xf32, #tpu.memory_space<vmem>>, vector<1x8x32xf32>
      %38 = vector.shape_cast %37 : vector<1x8x32xf32> to vector<8x32xf32>
      %c0_27 = arith.constant 0 : index
      %c0_28 = arith.constant 0 : index
      %39 = vector.load %arg4[%c0_27, %c0_28] : memref<2x32xf32, #tpu.memory_space<vmem>>, vector<1x32xf32>
      %c1 = arith.constant 1 : index
      %c0_29 = arith.constant 0 : index
      %40 = vector.load %arg4[%c1, %c0_29] : memref<2x32xf32, #tpu.memory_space<vmem>>, vector<1x32xf32>
      %41 = vector.broadcast %39 : vector<1x32xf32> to vector<8x32xf32>
      %42 = arith.mulf %38, %41 : vector<8x32xf32>
      %c0_30 = arith.constant 0 : index
      %c0_31 = arith.constant 0 : index
      %43 = vector.load %arg7[%c0_30, %c0_31] : memref<8x32xf32, #tpu.memory_space<vmem>>, vector<8x32xf32>
      tpu.vector_store %arg7[%c0_30, %c0_31], %42 {strides = array<i32>} : memref<8x32xf32, #tpu.memory_space<vmem>>, vector<8x32xf32>,
      %cst_32 = arith.constant dense<0.000000e+00> : vector<1x8xf32>
      %44 = tpu.matmul %40, %38, %cst_32 {dimension_numbers = #tpu.dot_dimension_numbers<[1], [1], [0], [0], [0, 0, 1, 0], [], []>} : vector<1x32xf32>, vector<8x32xf32>, vector<1x8xf32> -> vector<1x8xf32>
      %c0_33 = arith.constant 0 : index
      %c0_34 = arith.constant 0 : index
      %45 = vector.load %arg8[%c0_33, %c0_34] : memref<1x8xf32, #tpu.memory_space<vmem>>, vector<1x8xf32>
      tpu.vector_store %arg8[%c0_33, %c0_34], %44 {strides = array<i32>} : memref<1x8xf32, #tpu.memory_space<vmem>>, vector<1x8xf32>,
      %cst_35 = arith.constant 0.000000e+00 : f32
      %46 = vector.broadcast %cst_35 : f32 to vector<1x32xf32>
      %c0_36 = arith.constant 0 : index
      %c0_37 = arith.constant 0 : index
      %47 = vector.load %arg9[%c0_36, %c0_37] : memref<1x32xf32, #tpu.memory_space<vmem>>, vector<1x32xf32>
      tpu.vector_store %arg9[%c0_36, %c0_37], %46 {strides = array<i32>} : memref<1x32xf32, #tpu.memory_space<vmem>>, vector<1x32xf32>,
    } else {
    }
    %c0 = arith.constant 0 : index
    %c0_1 = arith.constant 0 : index
    %c0_2 = arith.constant 0 : index
    %3 = vector.load %arg2[%c0, %c0_1, %c0_2] : memref<1x8x32xf32, #tpu.memory_space<vmem>>, vector<1x8x32xf32>
    %4 = vector.shape_cast %3 : vector<1x8x32xf32> to vector<8x32xf32>
    %c0_3 = arith.constant 0 : index
    %c0_4 = arith.constant 0 : index
    %5 = vector.load %arg7[%c0_3, %c0_4] : memref<8x32xf32, #tpu.memory_space<vmem>>, vector<8x32xf32>
    %cst = arith.constant dense<0.000000e+00> : vector<8x8xf32>
    %6 = tpu.matmul %4, %5, %cst {dimension_numbers = #tpu.dot_dimension_numbers<[1], [1], [0], [0], [0, 0, 1, 0], [], []>} : vector<8x32xf32>, vector<8x32xf32>, vector<8x8xf32> -> vector<8x8xf32>
    %c0_5 = arith.constant 0 : index
    %c0_6 = arith.constant 0 : index
    %7 = vector.load %arg8[%c0_5, %c0_6] : memref<1x8xf32, #tpu.memory_space<vmem>>, vector<1x8xf32>
    %8 = vector.broadcast %7 : vector<1x8xf32> to vector<8x8xf32>
    %9 = arith.addf %6, %8 : vector<8x8xf32>
    %cst_7 = arith.constant dense<0xFF800000> : vector<8xf32>
    %10 = vector.multi_reduction <maximumf>, %9, %cst_7 [1] : vector<8x8xf32> to vector<8xf32>
    %11 = vector.shape_cast %10 : vector<8xf32> to vector<8x1xf32>
    %12 = vector.broadcast %11 : vector<8x1xf32> to vector<8x8xf32>
    %13 = arith.subf %9, %12 : vector<8x8xf32>
    %14 = math.exp %13 : vector<8x8xf32>
    %cst_8 = arith.constant dense<0.000000e+00> : vector<8xf32>
    %15 = vector.multi_reduction <add>, %14, %cst_8 [1] : vector<8x8xf32> to vector<8xf32>
    %16 = vector.shape_cast %15 : vector<8xf32> to vector<8x1xf32>
    %17 = tpu.reciprocal %16 {approx = true} : vector<8x1xf32> -> vector<8x1xf32>
    %18 = arith.mulf %16, %17 : vector<8x1xf32>
    %cst_9 = arith.constant 2.000000e+00 : f32
    %19 = vector.broadcast %cst_9 : f32 to vector<8x1xf32>
    %20 = arith.subf %19, %18 : vector<8x1xf32>
    %21 = arith.mulf %17, %20 : vector<8x1xf32>
    %22 = vector.broadcast %21 : vector<8x1xf32> to vector<8x8xf32>
    %23 = arith.mulf %14, %22 : vector<8x8xf32>
    %c0_10 = arith.constant 0 : index
    %c0_11 = arith.constant 0 : index
    %c0_12 = arith.constant 0 : index
    %24 = vector.load %arg3[%c0_10, %c0_11, %c0_12] : memref<1x8x32xf32, #tpu.memory_space<vmem>>, vector<1x8x32xf32>
    %25 = vector.shape_cast %24 : vector<1x8x32xf32> to vector<8x32xf32>
    %cst_13 = arith.constant dense<0.000000e+00> : vector<8x32xf32>
    %26 = tpu.matmul %23, %25, %cst_13 {dimension_numbers = #tpu.dot_dimension_numbers<[1], [0], [0], [1], [0, 0, 1, 1], [], []>} : vector<8x8xf32>, vector<8x32xf32>, vector<8x32xf32> -> vector<8x32xf32>
    %c0_14 = arith.constant 0 : index
    %c0_15 = arith.constant 0 : index
    %c0_16 = arith.constant 0 : index
    %27 = vector.load %arg5[%c0_14, %c0_15, %c0_16] : memref<1x8x32xf32, #tpu.memory_space<vmem>>, vector<1x8x32xf32>
    %28 = vector.shape_cast %27 : vector<1x8x32xf32> to vector<8x32xf32>
    %29 = vector.shape_cast %26 : vector<8x32xf32> to vector<1x8x32xf32>
    tpu.vector_store %arg5[%c0_14, %c0_15, %c0_16], %29 {strides = array<i32>} : memref<1x8x32xf32, #tpu.memory_space<vmem>>, vector<1x8x32xf32>,
    %c0_17 = arith.constant 0 : index
    %c0_18 = arith.constant 0 : index
    %30 = vector.load %arg9[%c0_17, %c0_18] : memref<1x32xf32, #tpu.memory_space<vmem>>, vector<1x32xf32>
    %cst_19 = arith.constant dense<0.000000e+00> : vector<1x32xf32>
    %31 = tpu.matmul %21, %4, %cst_19 {dimension_numbers = #tpu.dot_dimension_numbers<[0], [0], [1], [1], [0, 1, 1, 1], [], []>} : vector<8x1xf32>, vector<8x32xf32>, vector<1x32xf32> -> vector<1x32xf32>
    %32 = arith.addf %30, %31 : vector<1x32xf32>
    %c0_20 = arith.constant 0 : index
    %c0_21 = arith.constant 0 : index
    %33 = vector.load %arg9[%c0_20, %c0_21] : memref<1x32xf32, #tpu.memory_space<vmem>>, vector<1x32xf32>
    tpu.vector_store %arg9[%c0_20, %c0_21], %32 {strides = array<i32>} : memref<1x32xf32, #tpu.memory_space<vmem>>, vector<1x32xf32>,
    %c0_i32_22 = arith.constant 0 : i32
    %34 = arith.cmpi eq, %arg1, %c0_i32_22 : i32
    %35 = arith.extui %34 : i1 to i32
    %c0_i32_23 = arith.constant 0 : i32
    %36 = arith.cmpi ne, %35, %c0_i32_23 : i32
    scf.if %36 {
      %c0_24 = arith.constant 0 : index
      %c0_25 = arith.constant 0 : index
      %37 = vector.load %arg9[%c0_24, %c0_25] : memref<1x32xf32, #tpu.memory_space<vmem>>, vector<1x32xf32>
      %c0_26 = arith.constant 0 : index
      %c0_27 = arith.constant 0 : index
      %c0_28 = arith.constant 0 : index
      %38 = vector.load %arg6[%c0_26, %c0_27, %c0_28] : memref<1x1x32xf32, #tpu.memory_space<vmem>>, vector<1x1x32xf32>
      %39 = vector.shape_cast %38 : vector<1x1x32xf32> to vector<1x32xf32>
      %40 = vector.shape_cast %37 : vector<1x32xf32> to vector<1x1x32xf32>
      tpu.vector_store %arg6[%c0_26, %c0_27, %c0_28], %40 {strides = array<i32>} : memref<1x1x32xf32, #tpu.memory_space<vmem>>, vector<1x1x32xf32>,
    } else {
    }
    return
  }
  func.func @transform_0(%arg0: i32, %arg1: i32) -> (i32, i32, i32) {
    %c0_i32 = arith.constant 0 : i32
    %c0_i32_0 = arith.constant 0 : i32
    return %arg0, %arg1, %c0_i32 : i32, i32, i32
  }
  func.func @transform_1(%arg0: i32, %arg1: i32) -> (i32, i32, i32) {
    %c0_i32 = arith.constant 0 : i32
    %c0_i32_0 = arith.constant 0 : i32
    %c0_i32_1 = arith.constant 0 : i32
    return %arg0, %c0_i32, %c0_i32_0 : i32, i32, i32
  }
  func.func @transform_2(%arg0: i32, %arg1: i32) -> (i32, i32) {
    %c0_i32 = arith.constant 0 : i32
    %c0_i32_0 = arith.constant 0 : i32
    %c0_i32_1 = arith.constant 0 : i32
    return %c0_i32, %c0_i32_0 : i32, i32
  }
  func.func @transform_3(%arg0: i32, %arg1: i32) -> (i32, i32, i32) {
    %c0_i32 = arith.constant 0 : i32
    %c0_i32_0 = arith.constant 0 : i32
    return %arg0, %arg1, %c0_i32 : i32, i32, i32
  }
  func.func @transform_4(%arg0: i32, %arg1: i32) -> (i32, i32, i32) {
    %c0_i32 = arith.constant 0 : i32
    %c0_i32_0 = arith.constant 0 : i32
    %c0_i32_1 = arith.constant 0 : i32
    return %arg0, %c0_i32, %c0_i32_0 : i32, i32, i32
  }
}

</mosaic_0001>

<bundles_post_ra>
// kernel: tpu_custom_call.1
= control target key start
LH: loop header
LB: loop body
LE: loop exit
PB: predicated region body
PF: predicated region fallthrough
CT: control target
= control target key end

     0   :  { %s1528_s0 = inlined_call_operand.hbm [shape: f32[2,8,32], index: 0, kind: input, shape index: {}]   ;;  %s1529_s1 = inlined_call_operand.hbm [shape: f32[2,8,32], index: 1, kind: input, shape index: {}]   ;;  %s1530_s2 = inlined_call_operand.hbm [shape: f32[2,32], index: 2, kind: input, shape index: {}]   ;;  %s1531_s3 = inlined_call_operand.hbm [shape: f32[2,8,32], index: 3, kind: output, shape index: {0}]   ;;  %s1532_s4 = inlined_call_operand.hbm [shape: f32[2,1,32], index: 4, kind: output, shape index: {1}]  }
   0x1   :  { %1539 = sst [smem:[#allocation21_spill]] %s1530_s2 }
   0x2   :  { %10 = vsyncpa [#allocation6], 0 }
   0x3   :  { %12 = vsyncpa [#allocation6 + $0x1], 0 }
   0x4   :  { %13 = vsyncpa [#allocation9], 0 }
   0x5   :  { %15 = vsyncpa [#allocation9 + $0x1], 0 }
   0x6   :  { %16 = vsyncpa [#allocation7], 0 }
   0x7   :  { %18 = vsyncpa [#allocation7 + $0x1], 0 }
   0x8   :  { %19 = vsyncpa [#allocation13], 0 }
   0x9   :  { %21 = vsyncpa [#allocation13 + $0x1], 0  ;;  %s1233_s15 = smov 0   ;;  %s1235_s16 = smov 0  }
   0xa   :  { %s1237_s17 = smov 0   ;;  %s1239_s18 = smov 0  }
   0xb   :  { %s1241_s19 = smov 0   ;;  %s1243_s20 = smov 0  }
   0xc LB: > { %1540 = sst [smem:[#allocation19_spill]] %s1195_s19  ;;  %s1264_s21 = sadd.s32 4294967295, %s1199_s20   ;;  %s1199_s20 = sphi %s1243_s20, %s27_s20   ;;  %s1195_s19 = sphi %s1241_s19, %s1560_s19   ;;  %s1191_s18 = sphi %s1239_s18, %s1559_s18   ;;  %s1187_s17 = sphi %s1237_s17, %s1563_s17   ;;  %s1183_s16 = sphi %s1235_s16, %s1562_s16   ;;  %s1179_s15 = sphi %s1233_s15, %s1561_s15  }
   0xd   : > { %s846_s22 = sadd.s32 4294967294, %s1199_s20   ;;  %p61_p0 = scmp.ne.s32.totalorder %s1183_s16, %s1179_s15 }
   0xe   : > { %p1533_p1 = scmp.eq.s32.totalorder %s1264_s21, 0  ;;  %p140_p3 = scmp.eq.s32.totalorder %s846_s22, 1 }
   0xf   : > { %p847_p5 = scmp.ge.s32.totalorder %s1199_s20, 1  ;;  %p173_p7 = scmp.lt.s32.totalorder %s1199_s20, 3 }
  0x10   : > { %p1273_p4 = por %p1533_p1, %p61_p0  ;;  %p1278_p6 = por %p140_p3, %p61_p0 }
  0x11   : > { %p1283_p8 = pnand %p847_p5, %p173_p7  ;;  %s1201_s26 = smov [#allocation10]  }
  0x12   : > { %s1541_s23 = scalar_select %p1273_p4, 1, 0 }
  0x13   : > { %s1542_s24 = scalar_select %p1278_p6, 1, 0 }
  0x14   : > { %s1543_s25 = scalar_select %p1283_p8, 1, 0 }
  0x15   : > { %s186_s27 = sshll.u32 %s1201_s26, 4  ;;  %p912_p10 = pneg %p1283_p8  ;;  %s187_s27 = int_to_ptr.vmem [resolvable:$true] %s186_s27 }
  0x16   : > { %s39_s29 = sadd.s32 1, %s1195_s19  ;;  %s48_s30 = sadd.s32 1, %s1187_s17 }
  0x17   : > { %p1292_p11 = pnand %p912_p10, %p1533_p1  ;;  %p1298_p12 = scmp.ge.s32.totalorder %s39_s29, 2 }
  0x18   : > { %s1546_s2 = sld [smem:[#allocation21_spill]] }
  0x19   : > { %s1545_s5 = scalar_select %p1298_p12, 1, 0 }
  0x1a   : > { %p991_p0 = pneg %p1292_p11 }
  0x1e   : > { %s989_s8 = scalar_lea.hbm %s1546_s2, 32 }
  0x1f   : > { %p990_p13 = scmp.ne.s32.totalorder %s1546_s2, %s989_s8  ;;  %p996_p7 = scmp.lt.u32.totalorder %s989_s8, %s1546_s2 }
  0x21   : > { %p992_p3 = pnand %p991_p0, %p990_p13 }
  0x23   : > { %p993_p5 = pneg %p992_p3 }
  0x25   : > { %p998_p10 = pnand %p996_p7, %p993_p5 }
  0x27   : > { %1001 = shalt.err (!%p998_p10)
}
  0x28   : > { %s1002_s13 = scalar_lea.vmem %s187_s27, 32  ;;  %p1010_p6 = scmp.lt.s32.totalorder %s187_s27, %s187_s27 }
  0x29   : > { %p1003_p9 = scmp.ne.s32.totalorder %s187_s27, %s1002_s13  ;;  %p1011_p4 = scmp.lt.s32.totalorder %s1002_s13, %s1002_s13 }
  0x2b   : > { %p1005_p1 = pnand %p1003_p9, %p991_p0  ;;  %p1012_p8 = por %p1011_p4, %p1010_p6 }
  0x2d   : > { %p1006_p2 = pneg %p1005_p1 }
  0x2f   : > { %p1013_p12 = pnand %p1012_p8, %p1006_p2 }
  0x31   : > { %1016 = shalt.err (!%p1013_p12)
}
  0x32   : > { %915 = dma.hbm_to_vmem [thread:$0]  (!%p1292_p11), %s1546_s2, 32, %s187_s27, [#allocation9]  }
  0x33   : > { %p1547_p1 = scmp.ne.s32.totalorder %s1545_s5, 0  ;;  %p55_p2 = scmp.ne.s32.totalorder %s1187_s17, %s1183_s16 }
  0x34   : > { %p56_p4 = scmp.eq.s32.totalorder %s1199_s20, 0  ;;  %p931_p6 = scmp.lt.s32.totalorder %s1199_s20, 2 }
  0x35   : > { %s1565_s29 = smov (%p1547_p1, %s39_s29), 0  ;;  %p1549_p12 = scmp.eq.s32.totalorder %s1264_s21, 1 }
  0x36   : > { %1548 = sst [smem:[#allocation20_spill]] %s1565_s29  ;;  %s43_s26 = ssub.s32 %s1195_s19, %s1565_s29 }
  0x37   : > { %p46_p8 = scmp.eq.s32.totalorder %s43_s26, 0  ;;  %p57_p9 = por %p56_p4, %p55_p2 }
  0x38   : > { %p1330_p13 = por %p1549_p12, %p55_p2  ;;  %s197_s6 = sand.u32 1, %s1187_s17  }
  0x39   : > { %s1338_s7 = scalar_select %p46_p8, %s1187_s17, %s48_s30  }
  0x3a   : > { %s1550_s28 = scalar_select %p1330_p13, 1, 0 }
  0x3b   : > { %s1340_s27 = sshll.u32 %s197_s6, 3  ;;  %s851_s5 = sshll.u32 %s1195_s19, 7 }
  0x3c   : > { %s1346_s10 = scalar_lea.hbm %s1528_s0, %s851_s5  ;;  %s201_s11 = scalar_lea.vmem [#allocation5], %s1340_s27 }
  0x3d   : > { %s209_s12 = sshll.u32 %s201_s11, 4  ;;  %p1351_p11 = pnand %p931_p6, %p57_p9  ;;  %s1349_s12 = int_to_ptr.vmem [resolvable:$true] %s209_s12 }
  0x3e   : > { %s1358_s22 = scalar_lea.hbm %s1529_s1, %s851_s5  ;;  %s216_s26 = sand.u32 1, %s1199_s20  }
  0x3f   : > { %s198_s8 = scalar_lea.sflag [#allocation6], %s197_s6  ;;  %s1017_s9 = scalar_lea.hbm %s1346_s10, 128 }
  0x40   : > { %p1018_p0 = scmp.ne.s32.totalorder %s1346_s10, %s1017_s9  ;;  %p1019_p3 = pneg %p1351_p11 }
  0x41   : > { %s1022_s29 = scalar_lea.hbm %s1528_s0, 256  ;;  %p1023_p10 = scmp.lt.u32.totalorder %s1346_s10, %s1528_s0 }
  0x42   : > { %p1020_p5 = pnand %p1019_p3, %p1018_p0  ;;  %p1024_p1 = scmp.lt.u32.totalorder %s1022_s29, %s1017_s9 }
  0x43   : > { %p1026_p4 = scmp.lt.u32.totalorder %s1017_s9, %s1346_s10 }
  0x44   : > { %p1021_p7 = pneg %p1020_p5  ;;  %p1025_p2 = por %p1024_p1, %p1023_p10 }
  0x46   : > { %p1027_p6 = por %p1026_p4, %p1025_p2 }
  0x48   : > { %p1028_p8 = pnand %p1027_p6, %p1021_p7 }
  0x4a   : > { %1031 = shalt.err (!%p1028_p8)
}
  0x4b   : > { %s1032_s6 = scalar_lea.vmem %s1349_s12, 128  ;;  %s1202_s2 = smov [#allocation5]  }
  0x4c   : > { %p1033_p9 = scmp.ne.s32.totalorder %s1349_s12, %s1032_s6  ;;  %s1037_s5 = sshll.u32 %s1202_s2, 4  ;;  %s1038_s5 = int_to_ptr.vmem [resolvable:$false] %s1037_s5 }
  0x4d   : > { %s1039_s19 = scalar_lea.vmem %s1038_s5, 256  ;;  %p1040_p5 = scmp.lt.s32.totalorder %s1349_s12, %s1038_s5 }
  0x4e   : > { %p1035_p12 = pnand %p1033_p9, %p1019_p3  ;;  %p1041_p10 = scmp.lt.s32.totalorder %s1039_s19, %s1032_s6 }
  0x50   : > { %p1036_p0 = pneg %p1035_p12  ;;  %p1042_p1 = por %p1041_p10, %p1040_p5 }
  0x52   : > { %p1043_p2 = pnand %p1042_p1, %p1036_p0 }
  0x54   : > { %1046 = shalt.err (!%p1043_p2)
}
  0x55   : > { %919 = dma.hbm_to_vmem [thread:$0]  (!%p1351_p11), %s1346_s10, 128, %s1349_s12, %s198_s8  }
  0x56   : > { %s220_s29 = scalar_lea.vmem [#allocation8], %s1340_s27  ;;  %s217_s9 = scalar_lea.sflag [#allocation9], %s216_s26 }
  0x57   : > { %s227_s14 = sshll.u32 %s220_s29, 4  ;;  %s1047_s11 = scalar_lea.hbm %s1358_s22, 128  ;;  %s228_s14 = int_to_ptr.vmem [resolvable:$true] %s227_s14 }
  0x58   : > { %p1048_p7 = scmp.ne.s32.totalorder %s1358_s22, %s1047_s11  ;;  %s1052_s2 = scalar_lea.hbm %s1529_s1, 256 }
  0x59   : > { %p1053_p8 = scmp.lt.u32.totalorder %s1358_s22, %s1529_s1  ;;  %p1054_p9 = scmp.lt.u32.totalorder %s1052_s2, %s1047_s11 }
  0x5a   : > { %p1050_p4 = pnand %p1048_p7, %p1019_p3  ;;  %p1056_p0 = scmp.lt.u32.totalorder %s1047_s11, %s1358_s22 }
  0x5b   : > { %p1055_p12 = por %p1054_p9, %p1053_p8 }
  0x5c   : > { %p1051_p6 = pneg %p1050_p4 }
  0x5d   : > { %p1057_p5 = por %p1056_p0, %p1055_p12 }
  0x5f   : > { %p1058_p10 = pnand %p1057_p5, %p1051_p6 }
  0x61   : > { %1061 = shalt.err (!%p1058_p10)
}
  0x62   : > { %s1062_s27 = scalar_lea.vmem %s228_s14, 128  ;;  %s1203_s10 = smov [#allocation8]  }
  0x63   : > { %p1063_p1 = scmp.ne.s32.totalorder %s228_s14, %s1062_s27  ;;  %s1067_s12 = sshll.u32 %s1203_s10, 4  ;;  %s1068_s12 = int_to_ptr.vmem [resolvable:$false] %s1067_s12 }
  0x64   : > { %s1069_s26 = scalar_lea.vmem %s1068_s12, 256  ;;  %p1070_p4 = scmp.lt.s32.totalorder %s228_s14, %s1068_s12 }
  0x65   : > { %p1065_p2 = pnand %p1063_p1, %p1019_p3  ;;  %p1071_p13 = scmp.lt.s32.totalorder %s1069_s26, %s1062_s27 }
  0x67   : > { %p1066_p7 = pneg %p1065_p2  ;;  %p1072_p8 = por %p1071_p13, %p1070_p4 }
  0x69   : > { %p1073_p9 = pnand %p1072_p8, %p1066_p7 }
  0x6b   : > { %1076 = shalt.err (!%p1073_p9)
}
  0x6c   : > { %922 = dma.hbm_to_vmem [thread:$0]  (!%p1351_p11), %s1358_s22, 128, %s228_s14, %s217_s9  }
  0x6d   : > { %p1552_p6 = scmp.ne.s32.totalorder %s1543_s25, 0 }
  0x6e   : > { %s1411_s8 = sand.u32 (!%p1552_p6), 1, %s1183_s16   ;;  %p1553_p13 = scmp.ne.s32.totalorder (!%p1552_p6), %s1541_s23, 0 }
  0x6f   : > { %236 = sbr.rel (%p1552_p6) target bundleno = 1036 (0x40c), region = 32  ;;  %s1414_s29 = sshll.u32 (!%p1552_p6), %s1411_s8, 3 }
  0x70   : > { %s239_s11 = scalar_lea.sflag (!%p1552_p6), [#allocation6], %s1411_s8  ;;  %s242_s13 = scalar_lea.vmem (!%p1552_p6), [#allocation5], %s1414_s29 }
  0x76   : > { %1158 = dma.done.wait (%p1553_p13), %s239_s11, 128  }
  0x77   : > { %1160 = vsyncadd (%p1553_p13), %s239_s11, 4294967168  ;;  %s247_s25 = sand.u32 1, %s1264_s21   ;;  %s251_s22 = scalar_lea.vmem [#allocation8], %s1414_s29 }
  0x78   : > { %s248_s30 = scalar_lea.sflag [#allocation9], %s247_s25 }
  0x79   : > { %1162 = dma.done.wait (%p1553_p13), %s248_s30, 128  }
  0x7a   : > { %1164 = vsyncadd (%p1553_p13), %s248_s30, 4294967168  ;;  %p1554_p11 = scmp.eq.s32.totalorder %s1264_s21, 0 }
  0x7c   : > { %1166 = dma.done.wait (%p1554_p11), [#allocation9], 32   ;;  %p1555_p3 = pmov %p1554_p11 }
  0x7d   : > { %v1204_v0 = vmov 0.0   ;;  %vm1205_vm0 = vmmov 0   ;;  %vm301_vm1 = vcmask 261120   ;;  %v293_v1 = vld [vmem:[%s251_s22] sm:$0xff]  ;;  %v859_v2 = vld [vmem:[#allocation10] ss:$0 sm:$0xff] }
  0x7e   : > { %1168 = vsyncadd (%p1555_p3), [#allocation9], 4294967264  ;;  %880 = vmatprep.subr.mxu0 %v1204_v0  ;;  %882 = vmatprep.mubr.msk.f32.mxu0 %vm1205_vm0, %v1204_v0  ;;  %v300_v3 = vmul.f32 %v859_v2, %v293_v1  ;;  %v295_v4 = vld [vmem:[#allocation10 + $0x1] sm:$0x1]  ;;  %vm379_vm2 = vcmask 57344   ;;  %vm469_vm3 = vcmask 64512  }
  0x7f   : > { %885 = vmatprep.subr.mxu1 %v1204_v0  ;;  %887 = vmatprep.mubr.msk.f32.mxu1 %vm1205_vm0, %v1204_v0  ;;  %v383_v6 = vld [vmem:[%s242_s13] sm:$0xff]  ;;  %vm381_vm4 = vcmask 253952   ;;  %s282_s21 = scalar_lea.vmem [#allocation11], %s1414_s29  ;;  %s868_s23 = sshll.u32 %s1191_s18, 7 }
  0x80   : > { %881 = vmatpush3.xpose.msk.msra.mxu0 %vm301_vm1, %v293_v1  ;;  %302 = vst.msk [vmem:[#allocation2] sm:$0xff] %vm301_vm1, %v300_v3  ;;  %s1452_s6 = scalar_lea.hbm %s1531_s3, %s868_s23  ;;  %s692_s2 = sshll.u32 %s282_s21, 4  ;;  %s693_s2 = int_to_ptr.vmem [resolvable:$true] %s692_s2 }
  0x81   : > { %890 = vmatprep.subr.mxu0 %v1204_v0  ;;  %382 = vst.msk [vmem:[#allocation4] sm:$0x1] %vm381_vm4, %v1204_v0  ;;  %s674_s5 = scalar_lea.sflag [#allocation7], %s1411_s8  ;;  %s1077_s19 = scalar_lea.vmem %s693_s2, 128 }
  0x82   : > { %p1078_p12 = scmp.ne.s32.totalorder %s693_s2, %s1077_s19  ;;  %p1556_p0 = scmp.ne.s32.totalorder %s1550_s28, 0 }
  0x83   : > { %883 = vmatmul.mubr.msk.f32.vlgmr.msra.gmra.mrb[0].mxu0 %vm301_vm1, %v295_v4  ;;  %s1206_s27 = smov [#allocation11]  }
  0x84   : > { %891 = vmatpush3.msra.mxu0 %v293_v1  ;;  %892 = vmatprep.mubr.msk.f32.mxu0 %vm1205_vm0, %v1204_v0  ;;  %p1079_p5 = pnand %p1078_p12, %p1556_p0  ;;  %s1081_s10 = sshll.u32 %s1206_s27, 4  ;;  %s1082_s10 = int_to_ptr.vmem [resolvable:$false] %s1081_s10 }
  0x85   : > { %s1083_s12 = scalar_lea.vmem %s1082_s10, 256  ;;  %p1084_p1 = scmp.lt.s32.totalorder %s693_s2, %s1082_s10 }
  0x86   : > { %p1080_p10 = pneg %p1079_p5  ;;  %p1085_p2 = scmp.lt.s32.totalorder %s1083_s12, %s1077_s19 }
  0x87   : > { %v384_v5 = vld [vmem:[#allocation2] sm:$0xff] }
  0x88   : > { %886 = vmatpush3.xpose.msk.msra.mxu1 %vm301_vm1, %v384_v5  ;;  %p1086_p7 = por %p1085_p2, %p1084_p1 }
  0x89   : > { %895 = vmatprep.subr.mxu1 %v1204_v0 }
  0x8a   : > { %p1087_p4 = pnand %p1086_p7, %p1080_p10 }
  0x8b   : > { %888 = vmatmul.mubr.msk.f32.vlgmr.msra.gmra.mrb[0].mxu1 %vm301_vm1, %v383_v6 }
  0x8c   : > { %896 = vmatpush3.msra.mxu1 %v383_v6  ;;  %897 = vmatprep.mubr.msk.f32.mxu1 %vm1205_vm0, %v1204_v0 }
 0x156   : > { %v375_v7 = vpop.f32.mrb[0].mxu0 }
 0x157   : > { %380 = vst.msk [vmem:[#allocation3] sm:$0x1] %vm379_vm2, %v375_v7  ;;  %v884_v8 = vpop.f32.mrb[1].mxu0 }
 0x15e   : > { %v862_v9 = vld [vmem:[#allocation3] ss:$0 sm:$0xff]  ;;  %v465_v10 = vpop.f32.mrb[0].mxu1 }
 0x15f   : > { %v466_v11 = vadd.f32 %v862_v9, %v465_v10  ;;  %v889_v12 = vpop.f32.mrb[1].mxu1 }
 0x161   : > { %v470_v13 = vsel %vm469_vm3, %v466_v11, -inf }
 0x162   : > { %471 = vmax.xlane.f32.xlu0 %v470_v13 }
 0x1ef   : > { %v472_v14 = vpop.xlane.xlu0 %471 }
 0x1f0   : > { %v473_v15 = vsub.f32 %v466_v11, %v472_v14 }
 0x1f2   : > { %v474_v16 = vmul.f32 1.442695, %v473_v15 }
 0x1f4   : > { %985 = vpow2.f32 %v474_v16 }
 0x1fe   : > { %v986_v17 = vpop.eup %985 }
 0x1ff   : > { %v476_v18 = vsel %vm469_vm3, %v986_v17, 0.0 }
 0x200   : > { %477 = vadd.xlane.f32.xlu0 %v476_v18 }
 0x28d   : > { %v478_v19 = vpop.xlane.xlu0 %477 }
 0x28e   : > { %987 = vrcp.f32 %v478_v19 }
 0x298   : > { %v988_v20 = vpop.eup %987 }
 0x299   : > { %v480_v21 = vmul.f32 %v988_v20, %v478_v19 }
 0x29b   : > { %v481_v22 = vsub.f32 2.0, %v480_v21 }
 0x29d   : > { %v482_v23 = vmul.f32 %v988_v20, %v481_v22 }
 0x29f   : > { %560 = vxpose.xlu1.b32.start.end [1/1] (short) (narrow) %v482_v23, 8  ;;  %v483_v24 = vmul.f32 %v986_v17, %v482_v23 }
 0x2a1   : > { %893 = vmatmul.mubr.msk.f32.vlgmr.msra.gmra.mrb[2].mxu0 %vm469_vm3, %v483_v24 }
 0x31f   : > { %v576_v25 = vpop.trf.xlu1 }
 0x320   : > { %898 = vmatmul.mubr.msk.f32.vlgmr.msra.gmra.mrb[2].mxu1 %vm469_vm3, %v576_v25 }
 0x374   : > { %v554_v26 = vpop.f32.mrb[2].mxu0 }
 0x375   : > { %558 = vst.msk [vmem:[%s282_s21] sm:$0xff] %vm301_vm1, %v554_v26  ;;  %v894_v27 = vpop.f32.mrb[3].mxu0 }
 0x376   : > { %1090 = shalt.err (!%p1087_p4)
}
 0x377   : > { %s1091_s26 = scalar_lea.hbm %s1452_s6, 128  ;;  %s1095_s13 = scalar_lea.hbm %s1531_s3, 256 }
 0x378   : > { %p1092_p8 = scmp.ne.s32.totalorder %s1452_s6, %s1091_s26  ;;  %p1096_p13 = scmp.lt.u32.totalorder %s1452_s6, %s1531_s3 }
 0x379   : > { %p1097_p11 = scmp.lt.u32.totalorder %s1095_s13, %s1091_s26  ;;  %p1099_p12 = scmp.lt.u32.totalorder %s1091_s26, %s1452_s6 }
 0x37a   : > { %p1093_p9 = pnand %p1092_p8, %p1556_p0 }
 0x37b   : > { %p1098_p3 = por %p1097_p11, %p1096_p13 }
 0x37c   : > { %p1094_p6 = pneg %p1093_p9 }
 0x37d   : > { %p1100_p5 = por %p1099_p12, %p1098_p3 }
 0x37f   : > { %p1101_p10 = pnand %p1100_p5, %p1094_p6 }
 0x381   : > { %1104 = shalt.err (!%p1101_p10)
}
 0x382   : > { %908 = dma.vmem_to_hbm [thread:$0]  (%p1556_p0), %s693_s2, 128, %s1452_s6, %s674_s5   ;;  %v559_v28 = vld [vmem:[#allocation4] sm:$0x1] }
 0x383   : > { %s869_s22 = sshll.u32 %s1191_s18, 4  ;;  %s288_s21 = scalar_lea.vmem [#allocation12], %s1411_s8 }
 0x384   : > { %s705_s23 = sshll.u32 %s288_s21, 4  ;;  %s1478_s19 = scalar_lea.hbm %s1532_s4, %s869_s22  ;;  %s1480_s23 = int_to_ptr.vmem [resolvable:$true] %s705_s23 }
 0x385   : > { %s679_s6 = scalar_lea.sflag [#allocation13], %s1411_s8  ;;  %s1105_s2 = scalar_lea.vmem %s1480_s23, 16 }
 0x386   : > { %p1106_p1 = scmp.ne.s32.totalorder %s1480_s23, %s1105_s2  ;;  %s1207_s18 = smov [#allocation12]  }
 0x387   : > { %s1109_s5 = sshll.u32 %s1207_s18, 4  ;;  %s1110_s5 = int_to_ptr.vmem [resolvable:$false] %s1109_s5 }
 0x388   : > { %p1107_p2 = pnand %p1106_p1, %p1556_p0  ;;  %s1111_s27 = scalar_lea.vmem %s1110_s5, 32 }
 0x389   : > { %p1112_p4 = scmp.lt.s32.totalorder %s1480_s23, %s1110_s5  ;;  %p1113_p8 = scmp.lt.s32.totalorder %s1111_s27, %s1105_s2 }
 0x38a   : > { %p1108_p7 = pneg %p1107_p2 }
 0x38b   : > { %p1114_p9 = por %p1113_p8, %p1112_p4 }
 0x38d   : > { %p1115_p6 = pnand %p1114_p9, %p1108_p7 }
 0x3f3   : > { %v661_v29 = vpop.f32.mrb[2].mxu1 }
 0x3f4   : > { %v665_v30 = vadd.f32 %v661_v29, %v559_v28  ;;  %v899_v31 = vpop.f32.mrb[3].mxu1 }
 0x3f6   : > { %667 = vst.msk [vmem:[#allocation4] sm:$0x1] %vm381_vm4, %v665_v30 }
 0x3fd   : > { %v671_v32 = vld [vmem:[#allocation4] sm:$0x1] }
 0x3fe   : > { %672 = vst.msk [vmem:[%s288_s21] sm:$0x1] %vm381_vm4, %v671_v32 }
 0x3ff   : > { %1118 = shalt.err (!%p1115_p6)
}
 0x400   : > { %s1119_s8 = scalar_lea.hbm %s1478_s19, 16  ;;  %s1123_s26 = scalar_lea.hbm %s1532_s4, 32 }
 0x401   : > { %p1120_p13 = scmp.ne.s32.totalorder %s1478_s19, %s1119_s8  ;;  %p1124_p12 = scmp.lt.u32.totalorder %s1478_s19, %s1532_s4 }
 0x402   : > { %p1125_p5 = scmp.lt.u32.totalorder %s1123_s26, %s1119_s8  ;;  %p1127_p1 = scmp.lt.u32.totalorder %s1119_s8, %s1478_s19 }
 0x403   : > { %p1121_p11 = pnand %p1120_p13, %p1556_p0 }
 0x404   : > { %p1126_p10 = por %p1125_p5, %p1124_p12 }
 0x405   : > { %p1122_p3 = pneg %p1121_p11 }
 0x406   : > { %p1128_p2 = por %p1127_p1, %p1126_p10 }
 0x408   : > { %p1129_p7 = pnand %p1128_p2, %p1122_p3 }
 0x40a   : > { %1132 = shalt.err (!%p1129_p7)
}
 0x40b   : > { %909 = dma.vmem_to_hbm [thread:$0]  (%p1556_p0), %s1480_s23, 16, %s1478_s19, %s679_s6  }
 0x40c PF: > { %s717_s13 = sand.u32 1, %s1179_s15   ;;  %p1557_p4 = scmp.ne.s32.totalorder %s1542_s24, 0 }
 0x40d   : > { %p1558_p8 = scmp.ge.s32.totalorder %s1199_s20, 2  ;;  %s718_s25 = scalar_lea.sflag [#allocation7], %s717_s13 }
 0x40f   : > { %p924_p9 = pnand %p1558_p8, %p1557_p4 }
 0x411   : > { %1170 = dma.done.wait (!%p924_p9), %s718_s25, 128  }
 0x412   : > { %1172 = vsyncadd (!%p924_p9), %s718_s25, 4294967168  ;;  %s727_s30 = scalar_lea.sflag [#allocation13], %s717_s13 }
 0x413   : > { %1174 = dma.done.wait (!%p924_p9), %s727_s30, 16  }
 0x414   : > { %1176 = vsyncadd (!%p924_p9), %s727_s30, 4294967280  ;;  %s27_s20 = sadd.s32 1, %s1199_s20   ;;  %s1559_s18 = sld [smem:[#allocation19_spill]] }
 0x415   : > { %p24_p6 = scmp.ge.s32.totalorder %s27_s20, 4   ;;  %s1560_s19 = sld [smem:[#allocation20_spill]] }
 0x416   : > { %s1561_s15 = smov %s1183_s16  ;;  %s1562_s16 = smov %s1187_s17 }
 0x417   : > { %s1563_s17 = smov %s1338_s7  ;;  %26 = sbr.rel (!%p24_p6) target bundleno = 12 (0xc), region = 119 }
 0x41e   :  { %731 = vsyncpa [#allocation6], 1 }
 0x41f   :  { %733 = vsyncpa [#allocation6 + $0x1], 1 }
 0x420   :  { %734 = vsyncpa [#allocation9], 1 }
 0x421   :  { %736 = vsyncpa [#allocation9 + $0x1], 1 }
 0x422   :  { %737 = vsyncpa [#allocation7], 1 }
 0x423   :  { %739 = vsyncpa [#allocation7 + $0x1], 1 }
 0x424   :  { %740 = vsyncpa [#allocation13], 1 }
 0x425   :  { %742 = vsyncpa [#allocation13 + $0x1], 1 }

</bundles_post_ra>
